<compile_context>
chip_gen: v7x
topology: tpu7x:2x2x1
jax: 0.10.0
libtpu: 0.0.40
codegen_flags: <defaults>
</compile_context>

<pallas_src>
import functools

import numpy as np
import jax
import jax.numpy as jnp
from jax import lax
from jax.experimental import pallas as pl
from jax.experimental.pallas import tpu as pltpu


def _round_up(x, m):
    return ((x + m - 1) // m) * m


def _infonce_kernel(q_ref, kt_ref, abn_ref, out_ref, *, scale, nn_p):
    # q_ref:   [tm, D]    pre-normalized (1/sqrt(temp)-scaled) normal-row block
    # kt_ref:  [D, Bp]    pre-normalized, pre-transposed features (resident)
    # abn_ref: [1, Bp]    1.0 on abnormal columns, 0.0 elsewhere / padding
    # out_ref: [tm, nn_p] loss tile over the normal-column prefix
    i = pl.program_id(0)
    tm = q_ref.shape[0]
    bp = kt_ref.shape[1]

    # logits[r, c] = <f_r, f_c> / (||f_r|| ||f_c|| * temperature): the
    # normalization and temperature are already folded into both operands.
    logits = jnp.dot(q_ref[...], kt_ref[...],
                     preferred_element_type=jnp.float32)      # [tm, Bp]

    # logits_without_ii = logits * (1 - eye): zero the global diagonal.
    row_ids = i * tm + lax.broadcasted_iota(jnp.int32, (tm, bp), 0)
    col_ids = lax.broadcasted_iota(jnp.int32, (tm, bp), 1)
    logits_wo = jnp.where(row_ids == col_ids, 0.0, logits)

    # TODO(synk): no log-sum-exp max-shift (matches the reference exactly);
    # only needed if temperature <= ~0.012 where exp() would overflow f32.
    exp_l = jnp.exp(logits_wo)                                 # [tm, Bp]
    sum_of_vium = jnp.sum(exp_l * abn_ref[...], axis=1, keepdims=True)  # [tm, 1]

    # Only the normal-column prefix is needed downstream (lane-aligned slice).
    l_nn = logits_wo[:, :nn_p]
    denom = exp_l[:, :nn_p] + sum_of_vium
    # loss = -(l_nn - log(denom)) * scale, as one fused expression.
    out_ref[...] = (scale * (jnp.log(denom) - l_nn)).astype(out_ref.dtype)


def infonce_loss(features, labels, temperature=0.1, scale_by_temperature=True):
    """Reproduces InfoNCELoss.forward(features, labels).

    features: array [B, D] float32
    labels:   concrete int array [B] (selection shape is data dependent)
    returns:  numpy array [Nn, Nn] where Nn = #(labels == 0)
    """
    labels = np.asarray(labels).reshape(-1)
    B, D = features.shape
    if labels.shape[0] != B:
        raise ValueError("Num of labels does not match num of features")

    normal_idx = np.nonzero(labels == 0)[0]
    abnormal_idx = np.nonzero(labels > 0)[0]
    nn = int(normal_idx.shape[0])
    if nn == 0:
        return np.zeros((0, 0), np.float32)

    # Stable permutation: normal samples first, then abnormal.
    perm = np.concatenate([normal_idx, abnormal_idx]).astype(np.int32)

    bp = _round_up(B, 128)           # lane-dense column axis for logits
    nn_p = _round_up(nn, 128)        # lane-dense normal-column prefix (output)

    # Row tile: up to 256 rows per step; shrink (down to 8) so the parallel
    # grid has >= 2 steps whenever possible (keeps v7x's second TC busy).
    tm = min(256, _round_up(nn, 8))
    while tm > 8 and _round_up(nn, tm) // tm < 2:
        tm = max(8, _round_up((tm + 1) // 2, 8))
    np_rows = _round_up(nn, tm)

    # One-time host-side prep (hoisted out of the kernel):
    #   reorder -> F.normalize(p=2, dim=1) -> fold 1/sqrt(temperature).
    inv_sqrt_temp = float(1.0 / np.sqrt(float(temperature)))
    f = jnp.take(jnp.asarray(features, jnp.float32), jnp.asarray(perm), axis=0)
    norm = jnp.sqrt(jnp.sum(f * f, axis=1, keepdims=True))
    fn = (f / jnp.maximum(norm, 1e-12)) * inv_sqrt_temp        # [B, D]

    q_pad = jnp.pad(fn[:nn], ((0, np_rows - nn), (0, 0)))      # [Np, D] normal rows
    kt = jnp.pad(fn, ((0, bp - B), (0, 0))).T                  # [D, Bp] resident RHS

    abn = np.zeros((1, bp), np.float32)
    abn[0, nn:B] = 1.0                                         # abnormal columns
    abn = jnp.asarray(abn)

    scale = float(temperature) if scale_by_temperature else 1.0
    kernel = functools.partial(_infonce_kernel, scale=scale, nn_p=nn_p)

    # VMEM budget: resident kt (single-buffered) + mask + double-buffered q/out
    # blocks + elementwise temps, with headroom; cap from the actual chip.
    try:
        vmem_cap = int(pltpu.get_tpu_info().vmem_capacity_bytes)
    except Exception:
        vmem_cap = 64 * 1024 * 1024
    vmem_est = 4 * (D * bp + bp + 2 * tm * D + 2 * tm * nn_p + 8 * tm * bp)
    vmem_limit = int(min(max(2 * vmem_est, 32 * 1024 * 1024),
                         int(0.85 * vmem_cap)))

    def _call(single_buffer_residents):
        if single_buffer_residents:
            kt_spec = pl.BlockSpec((D, bp), lambda i: (0, 0),
                                   pipeline_mode=pl.Buffered(1))
            abn_spec = pl.BlockSpec((1, bp), lambda i: (0, 0),
                                    pipeline_mode=pl.Buffered(1))
        else:
            kt_spec = pl.BlockSpec((D, bp), lambda i: (0, 0))
            abn_spec = pl.BlockSpec((1, bp), lambda i: (0, 0))
        return pl.pallas_call(
            kernel,
            out_shape=jax.ShapeDtypeStruct((np_rows, nn_p), jnp.float32),
            grid=(np_rows // tm,),
            in_specs=[
                pl.BlockSpec((tm, D), lambda i: (i, 0)),   # streamed row block
                kt_spec,                                   # resident RHS
                abn_spec,                                  # resident mask
            ],
            out_specs=pl.BlockSpec((tm, nn_p), lambda i: (i, 0)),
            compiler_params=pltpu.CompilerParams(
                dimension_semantics=("parallel",),
                vmem_limit_bytes=vmem_limit,
            ),
        )(q_pad, kt, abn)

    try:
        out = _call(True)       # single-buffered residents (saves D*Bp*4 B VMEM)
    except Exception:
        out = _call(False)      # fallback: default double-buffering

    out = np.asarray(jax.block_until_ready(out))
    # Normal rows/cols are the first nn entries of the reordered layout, in the
    # original relative order -> static slice reproduces the reference.
    return out[:nn, :nn]


def _reference_numpy(features, labels, temperature=0.1, scale_by_temperature=True):
    f = np.asarray(features, dtype=np.float32)
    labels = np.asarray(labels).reshape(-1)
    norm = np.maximum(np.linalg.norm(f, axis=1, keepdims=True), 1e-12)
    fn = f / norm
    logits = fn @ fn.T / temperature
    B = f.shape[0]
    logits_wo = logits * (np.ones((B, B), np.float32) - np.eye(B, dtype=np.float32))
    normal = labels == 0
    abnormal = labels > 0
    ln = logits_wo[normal]
    lnn = ln[:, normal]
    lna = ln[:, abnormal]
    sum_of_vium = np.sum(np.exp(lna), axis=1, keepdims=True)
    denominator = np.exp(lnn) + sum_of_vium
    log_probs = lnn - np.log(denominator)
    loss = -log_probs
    if scale_by_temperature:
        loss = loss * temperature
    return loss


if __name__ == "__main__":
    key = jax.random.PRNGKey(0)
    B, D = 8, 32
    features = jax.random.normal(key, (B, D), dtype=jnp.float32)
    # Deterministic labels: 0 = normal, >0 = abnormal
    labels = np.array([0, 1, 0, 0, 2, 0, 1, 0], dtype=np.int32)

    loss = infonce_loss(features, labels, temperature=0.1, scale_by_temperature=True)

    ref = _reference_numpy(np.asarray(features), labels, 0.1, True)
    np.testing.assert_allclose(loss, ref, rtol=1e-4, atol=1e-4)

    print("KERNEL_OK")
</pallas_src>

<mosaic_0001>
module attributes {stable_mosaic.version = 11 : i64} {
  func.func @_infonce_kernel(%arg0: i32, %arg1: memref<8x32xf32, #tpu.memory_space<vmem>>, %arg2: memref<32x128xf32, #tpu.memory_space<vmem>>, %arg3: memref<1x128xf32, #tpu.memory_space<vmem>>, %arg4: memref<8x128xf32, #tpu.memory_space<vmem>>) attributes {dimension_semantics = [#tpu.dimension_semantics<parallel>], iteration_bounds = array<i64: 1>, scalar_prefetch = 0 : i64, scratch_operands = 0 : i64, tpu.core_type = #tpu.core_type<tc>, window_params = [{transform_indices = @transform_0, window_bounds = array<i64: 8, 32>}, {pipeline_mode = #tpu.pipeline_mode<synchronous>, transform_indices = @transform_1, window_bounds = array<i64: 32, 128>}, {pipeline_mode = #tpu.pipeline_mode<synchronous>, transform_indices = @transform_2, window_bounds = array<i64: 1, 128>}, {transform_indices = @transform_3, window_bounds = array<i64: 8, 128>}]} {
    %c0 = arith.constant 0 : index
    %c0_0 = arith.constant 0 : index
    %0 = vector.load %arg1[%c0, %c0_0] : memref<8x32xf32, #tpu.memory_space<vmem>>, vector<8x32xf32>
    %c0_1 = arith.constant 0 : index
    %c0_2 = arith.constant 0 : index
    %1 = vector.load %arg2[%c0_1, %c0_2] : memref<32x128xf32, #tpu.memory_space<vmem>>, vector<32x128xf32>
    %cst = arith.constant dense<0.000000e+00> : vector<8x128xf32>
    %2 = tpu.matmul %0, %1, %cst {dimension_numbers = #tpu.dot_dimension_numbers<[1], [0], [0], [1], [0, 0, 1, 1], [], []>} : vector<8x32xf32>, vector<32x128xf32>, vector<8x128xf32> -> vector<8x128xf32>
    %c8_i32 = arith.constant 8 : i32
    %3 = arith.muli %arg0, %c8_i32 : i32
    %4 = tpu.iota {dimensions = array<i32: 0>} : vector<8x128xi32>
    %5 = vector.broadcast %3 : i32 to vector<8x128xi32>
    %6 = arith.addi %5, %4 : vector<8x128xi32>
    %7 = tpu.iota {dimensions = array<i32: 1>} : vector<8x128xi32>
    %8 = arith.cmpi eq, %6, %7 : vector<8x128xi32>
    %cst_3 = arith.constant 0.000000e+00 : f32
    %9 = vector.broadcast %cst_3 : f32 to vector<8x128xf32>
    %10 = arith.select %8, %9, %2 : vector<8x128xi1>, vector<8x128xf32>
    %11 = math.exp %10 : vector<8x128xf32>
    %c0_4 = arith.constant 0 : index
    %c0_5 = arith.constant 0 : index
    %12 = vector.load %arg3[%c0_4, %c0_5] : memref<1x128xf32, #tpu.memory_space<vmem>>, vector<1x128xf32>
    %13 = vector.broadcast %12 : vector<1x128xf32> to vector<8x128xf32>
    %14 = arith.mulf %11, %13 : vector<8x128xf32>
    %cst_6 = arith.constant dense<0.000000e+00> : vector<8xf32>
    %15 = vector.multi_reduction <add>, %14, %cst_6 [1] : vector<8x128xf32> to vector<8xf32>
    %16 = vector.shape_cast %15 : vector<8xf32> to vector<8x1xf32>
    %17 = vector.broadcast %16 : vector<8x1xf32> to vector<8x128xf32>
    %18 = arith.addf %11, %17 : vector<8x128xf32>
    %19 = math.log %18 : vector<8x128xf32>
    %20 = arith.subf %19, %10 : vector<8x128xf32>
    %cst_7 = arith.constant 1.000000e-01 : f32
    %21 = vector.broadcast %cst_7 : f32 to vector<8x128xf32>
    %22 = arith.mulf %21, %20 : vector<8x128xf32>
    %c0_8 = arith.constant 0 : index
    %c0_9 = arith.constant 0 : index
    %23 = vector.load %arg4[%c0_8, %c0_9] : memref<8x128xf32, #tpu.memory_space<vmem>>, vector<8x128xf32>
    tpu.vector_store %arg4[%c0_8, %c0_9], %22 {strides = array<i32>} : memref<8x128xf32, #tpu.memory_space<vmem>>, vector<8x128xf32>,
    return
  }
  func.func @transform_0(%arg0: i32) -> (i32, i32) {
    %c0_i32 = arith.constant 0 : i32
    %c0_i32_0 = arith.constant 0 : i32
    return %arg0, %c0_i32 : i32, i32
  }
  func.func @transform_1(%arg0: i32) -> (i32, i32) {
    %c0_i32 = arith.constant 0 : i32
    %c0_i32_0 = arith.constant 0 : i32
    %c0_i32_1 = arith.constant 0 : i32
    return %c0_i32, %c0_i32_0 : i32, i32
  }
  func.func @transform_2(%arg0: i32) -> (i32, i32) {
    %c0_i32 = arith.constant 0 : i32
    %c0_i32_0 = arith.constant 0 : i32
    %c0_i32_1 = arith.constant 0 : i32
    return %c0_i32, %c0_i32_0 : i32, i32
  }
  func.func @transform_3(%arg0: i32) -> (i32, i32) {
    %c0_i32 = arith.constant 0 : i32
    %c0_i32_0 = arith.constant 0 : i32
    return %arg0, %c0_i32 : i32, i32
  }
}

module attributes {stable_mosaic.version = 11 : i64} {
  func.func @_infonce_kernel(%arg0: i32, %arg1: memref<8x32xf32, #tpu.memory_space<vmem>>, %arg2: memref<32x128xf32, #tpu.memory_space<vmem>>, %arg3: memref<1x128xf32, #tpu.memory_space<vmem>>, %arg4: memref<8x128xf32, #tpu.memory_space<vmem>>) attributes {dimension_semantics = [#tpu.dimension_semantics<parallel>], iteration_bounds = array<i64: 1>, scalar_prefetch = 0 : i64, scratch_operands = 0 : i64, tpu.core_type = #tpu.core_type<tc>, window_params = [{transform_indices = @transform_0, window_bounds = array<i64: 8, 32>}, {pipeline_mode = #tpu.pipeline_mode<synchronous>, transform_indices = @transform_1, window_bounds = array<i64: 32, 128>}, {pipeline_mode = #tpu.pipeline_mode<synchronous>, transform_indices = @transform_2, window_bounds = array<i64: 1, 128>}, {transform_indices = @transform_3, window_bounds = array<i64: 8, 128>}]} {
    %c0 = arith.constant 0 : index
    %c0_0 = arith.constant 0 : index
    %0 = vector.load %arg1[%c0, %c0_0] : memref<8x32xf32, #tpu.memory_space<vmem>>, vector<8x32xf32>
    %c0_1 = arith.constant 0 : index
    %c0_2 = arith.constant 0 : index
    %1 = vector.load %arg2[%c0_1, %c0_2] : memref<32x128xf32, #tpu.memory_space<vmem>>, vector<32x128xf32>
    %cst = arith.constant dense<0.000000e+00> : vector<8x128xf32>
    %2 = tpu.matmul %0, %1, %cst {dimension_numbers = #tpu.dot_dimension_numbers<[1], [0], [0], [1], [0, 0, 1, 1], [], []>} : vector<8x32xf32>, vector<32x128xf32>, vector<8x128xf32> -> vector<8x128xf32>
    %c8_i32 = arith.constant 8 : i32
    %3 = arith.muli %arg0, %c8_i32 : i32
    %4 = tpu.iota {dimensions = array<i32: 0>} : vector<8x128xi32>
    %5 = vector.broadcast %3 : i32 to vector<8x128xi32>
    %6 = arith.addi %5, %4 : vector<8x128xi32>
    %7 = tpu.iota {dimensions = array<i32: 1>} : vector<8x128xi32>
    %8 = arith.cmpi eq, %6, %7 : vector<8x128xi32>
    %cst_3 = arith.constant 0.000000e+00 : f32
    %9 = vector.broadcast %cst_3 : f32 to vector<8x128xf32>
    %10 = arith.select %8, %9, %2 : vector<8x128xi1>, vector<8x128xf32>
    %11 = math.exp %10 : vector<8x128xf32>
    %c0_4 = arith.constant 0 : index
    %c0_5 = arith.constant 0 : index
    %12 = vector.load %arg3[%c0_4, %c0_5] : memref<1x128xf32, #tpu.memory_space<vmem>>, vector<1x128xf32>
    %13 = vector.broadcast %12 : vector<1x128xf32> to vector<8x128xf32>
    %14 = arith.mulf %11, %13 : vector<8x128xf32>
    %cst_6 = arith.constant dense<0.000000e+00> : vector<8xf32>
    %15 = vector.multi_reduction <add>, %14, %cst_6 [1] : vector<8x128xf32> to vector<8xf32>
    %16 = vector.shape_cast %15 : vector<8xf32> to vector<8x1xf32>
    %17 = vector.broadcast %16 : vector<8x1xf32> to vector<8x128xf32>
    %18 = arith.addf %11, %17 : vector<8x128xf32>
    %19 = math.log %18 : vector<8x128xf32>
    %20 = arith.subf %19, %10 : vector<8x128xf32>
    %cst_7 = arith.constant 1.000000e-01 : f32
    %21 = vector.broadcast %cst_7 : f32 to vector<8x128xf32>
    %22 = arith.mulf %21, %20 : vector<8x128xf32>
    %c0_8 = arith.constant 0 : index
    %c0_9 = arith.constant 0 : index
    %23 = vector.load %arg4[%c0_8, %c0_9] : memref<8x128xf32, #tpu.memory_space<vmem>>, vector<8x128xf32>
    tpu.vector_store %arg4[%c0_8, %c0_9], %22 {strides = array<i32>} : memref<8x128xf32, #tpu.memory_space<vmem>>, vector<8x128xf32>,
    return
  }
  func.func @transform_0(%arg0: i32) -> (i32, i32) {
    %c0_i32 = arith.constant 0 : i32
    %c0_i32_0 = arith.constant 0 : i32
    return %arg0, %c0_i32 : i32, i32
  }
  func.func @transform_1(%arg0: i32) -> (i32, i32) {
    %c0_i32 = arith.constant 0 : i32
    %c0_i32_0 = arith.constant 0 : i32
    %c0_i32_1 = arith.constant 0 : i32
    return %c0_i32, %c0_i32_0 : i32, i32
  }
  func.func @transform_2(%arg0: i32) -> (i32, i32) {
    %c0_i32 = arith.constant 0 : i32
    %c0_i32_0 = arith.constant 0 : i32
    %c0_i32_1 = arith.constant 0 : i32
    return %c0_i32, %c0_i32_0 : i32, i32
  }
  func.func @transform_3(%arg0: i32) -> (i32, i32) {
    %c0_i32 = arith.constant 0 : i32
    %c0_i32_0 = arith.constant 0 : i32
    return %arg0, %c0_i32 : i32, i32
  }
}

</mosaic_0001>

<bundles_post_ra>
// kernel: tpu_custom_call.1
= control target key start
LH: loop header
LB: loop body
LE: loop exit
PB: predicated region body
PF: predicated region fallthrough
CT: control target
= control target key end

     0   :  { %8 = vsyncpa [#allocation3], 0  ;;  %s345_s0 = inlined_call_operand.hbm [shape: f32[8,32], index: 0, kind: input, shape index: {}]   ;;  %s346_s1 = inlined_call_operand.hbm [shape: f32[32,128], index: 1, kind: input, shape index: {}]   ;;  %s347_s2 = inlined_call_operand.vmem [shape: f32[1,128], index: 2, kind: input, shape index: {}]   ;;  %s348_s3 = inlined_call_operand.hbm [shape: f32[8,128], index: 3, kind: output, shape index: {}]  }
   0x1   :  { %9 = vsyncpa [#allocation6], 0 }
   0x2   :  { %10 = vsyncpa [#allocation4], 0  ;;  %s271_s12 = smov [#allocation2]   ;;  %s272_s14 = smov [#allocation5]  }
   0x3   :  { %s17_s13 = sshll.u32 %s271_s12, 4  ;;  %s26_s15 = sshll.u32 %s272_s14, 4  ;;  %s18_s13 = int_to_ptr.vmem [resolvable:$true] %s17_s13  ;;  %s299_s15 = int_to_ptr.vmem [resolvable:$true] %s26_s15 }
   0x4   :  { %s199_s18 = scalar_lea.hbm %s345_s0, 128 }
   0x5   :  { %p200_p0 = scmp.ne.s32.totalorder %s345_s0, %s199_s18  ;;  %p203_p1 = scmp.lt.u32.totalorder %s199_s18, %s345_s0 }
   0x7   :  { %p205_p2 = pnand %p203_p1, %p200_p0 }
   0x9   :  { %208 = shalt.err (!%p205_p2)
}
   0xa   :  { %s209_s23 = scalar_lea.vmem %s18_s13, 128  ;;  %p214_p4 = scmp.lt.s32.totalorder %s18_s13, %s18_s13 }
   0xb   :  { %p210_p3 = scmp.ne.s32.totalorder %s18_s13, %s209_s23  ;;  %p215_p5 = scmp.lt.s32.totalorder %s209_s23, %s209_s23 }
   0xd   :  { %p216_p6 = por %p215_p5, %p214_p4 }
   0xf   :  { %p217_p7 = pnand %p216_p6, %p210_p3 }
  0x11   :  { %220 = shalt.err (!%p217_p7)
}
  0x12   :  { %20 = dma.hbm_to_vmem [thread:$0]  %s345_s0, 128, %s18_s13, [#allocation3]  }
  0x13   :  { %s221_s28 = scalar_lea.hbm %s346_s1, 512 }
  0x14   :  { %p222_p8 = scmp.ne.s32.totalorder %s346_s1, %s221_s28  ;;  %p225_p9 = scmp.lt.u32.totalorder %s221_s28, %s346_s1 }
  0x16   :  { %p227_p10 = pnand %p225_p9, %p222_p8 }
  0x18   :  { %230 = shalt.err (!%p227_p10)
}
  0x19   :  { %s231_s6 = scalar_lea.vmem %s299_s15, 512  ;;  %p236_p12 = scmp.lt.s32.totalorder %s299_s15, %s299_s15 }
  0x1a   :  { %p232_p11 = scmp.ne.s32.totalorder %s299_s15, %s231_s6  ;;  %p237_p13 = scmp.lt.s32.totalorder %s231_s6, %s231_s6 }
  0x1c   :  { %p238_p0 = por %p237_p13, %p236_p12 }
  0x1e   :  { %p239_p1 = pnand %p238_p0, %p232_p11 }
  0x20   :  { %242 = shalt.err (!%p239_p1)
}
  0x21   :  { %s273_s0 = smov 128   ;;  %s274_s7 = smov 8  }
  0x22   :  { %32 = dma.hbm_to_vmem [thread:$0]  %s346_s1, 512, %s299_s15, [#allocation6], %s273_s0, %s273_s0, %s274_s7  }
  0x23   :  { %265 = dma.done.wait [#allocation3], 128  }
  0x24   :  { %266 = vsyncadd [#allocation3], 4294967168 }
  0x25   :  { %267 = dma.done.wait [#allocation6], 512  }
  0x26   :  { %268 = vsyncadd [#allocation6], 4294966784  ;;  %v275_v0 = vmov 0.0|0.0   ;;  %vm276_vm0 = vmmov 0   ;;  %v277_v1 = vmov 0.0   ;;  %v42_v2 = vld [vmem:[#allocation5] sm:$0xff]  ;;  %v121_v9 = vlaneseq }
  0x27   :  { %181 = vmatprep.subr.bf16.mxu0 %v275_v0  ;;  %178 = vmatprep.mubr.msk.f32.mxu0 %vm276_vm0, %v277_v1  ;;  %v43_v3 = vld [vmem:[#allocation5 + $0x8] sm:$0xff]  ;;  %v44_v4 = vld [vmem:[#allocation5 + $0x10] sm:$0xff]  ;;  %v45_v6 = vld [vmem:[#allocation5 + $0x18] sm:$0xff]  ;;  %vm46_vm1 = vcmask 261120   ;;  %s278_s11 = smov [#allocation7]  }
  0x28   :  { %v182_v5 = vpack.c.bf16 %v43_v3, %v42_v2  ;;  %v185_v7 = vpack.c.bf16 %v45_v6, %v44_v4  ;;  %v41_v8 = vld [vmem:[#allocation2] sm:$0xff]  ;;  %v122_v10 = vshrl.u32 %v121_v9, 7  ;;  %v126_v11 = vand.u32 127, %v121_v9  ;;  %s153_s12 = sshll.u32 %s278_s11, 4  ;;  %s154_s12 = int_to_ptr.vmem [resolvable:$true] %s153_s12 }
  0x29   :  { %v164_v16 = vld [vmem:[%s347_s2] ss:$0 sm:$0xff]  ;;  %s243_s13 = scalar_lea.vmem %s154_s12, 128  ;;  %p248_p3 = scmp.lt.s32.totalorder %s154_s12, %s154_s12 }
  0x2a   :  { %183 = vmatpush3.bf16.msra.mxu0 %v182_v5  ;;  %vm127_vm2 = vcmp.eq.s32.totalorder %v122_v10, %v126_v11  ;;  %p244_p2 = scmp.ne.s32.totalorder %s154_s12, %s243_s13  ;;  %p249_p4 = scmp.lt.s32.totalorder %s243_s13, %s243_s13 }
  0x2b   :  { %184 = vmatprep.subr.bf16.mxu0 %v275_v0 }
  0x2c   :  { %p250_p5 = por %p249_p4, %p248_p3 }
  0x2e   :  { %186 = vmatpush3.bf16.msra.mxu0 %v185_v7  ;;  %p251_p6 = pnand %p250_p5, %p244_p2 }
  0x31   :  { %179 = vmatmul.mubr.msk.f32.vlgmr.msra.gmra.mrb[0].mxu0 %vm46_vm1, %v41_v8 }
 0x104   :  { %v116_v12 = vpop.f32.mrb[0].mxu0 }
 0x105   :  { %v128_v13 = vsel %vm127_vm2, 0.0, %v116_v12  ;;  %v180_v14 = vpop.f32.mrb[1].mxu0 }
 0x106   :  { %v129_v15 = vmul.f32 1.442695, %v128_v13 }
 0x108   :  { %195 = vpow2.f32 %v129_v15 }
 0x112   :  { %v196_v17 = vpop.eup %195 }
 0x113   :  { %v138_v18 = vmul.f32 %v196_v17, %v164_v16 }
 0x115   :  { %139 = vadd.xlane.f32.xlu0 %v138_v18 }
 0x1a2   :  { %v140_v19 = vpop.xlane.xlu0 %139 }
 0x1a3   :  { %v141_v20 = vadd.f32 %v196_v17, %v140_v19 }
 0x1a5   :  { %197 = vlog2.f32 %v141_v20 }
 0x1af   :  { %v198_v21 = vpop.eup %197 }
 0x1b0   :  { %v143_v22 = vmul.f32 0.6931472, %v198_v21 }
 0x1b2   :  { %v144_v23 = vsub.f32 %v143_v22, %v128_v13 }
 0x1b4   :  { %v145_v24 = vmul.f32 0.1, %v144_v23 }
 0x1b6   :  { %146 = vst [vmem:[#allocation7] sm:$0xff] %v145_v24 }
 0x1b7   :  { %254 = shalt.err (!%p251_p6)
}
 0x1b8   :  { %s255_s15 = scalar_lea.hbm %s348_s3, 128 }
 0x1b9   :  { %p256_p7 = scmp.ne.s32.totalorder %s348_s3, %s255_s15  ;;  %p259_p8 = scmp.lt.u32.totalorder %s255_s15, %s348_s3 }
 0x1bb   :  { %p261_p9 = pnand %p259_p8, %p256_p7 }
 0x1bd   :  { %264 = shalt.err (!%p261_p9)
}
 0x1be   :  { %156 = dma.vmem_to_hbm [thread:$0]  %s154_s12, 128, %s348_s3, [#allocation4]  }
 0x1bf   :  { %269 = dma.done.wait [#allocation4], 128  }
 0x1c0   :  { %270 = vsyncadd [#allocation4], 4294967168 }
 0x1c1   :  { %160 = vsyncpa [#allocation3], 1 }
 0x1c2   :  { %161 = vsyncpa [#allocation6], 1 }
 0x1c3   :  { %162 = vsyncpa [#allocation4], 1 }

// kernel: tpu_custom_call.1
= control target key start
LH: loop header
LB: loop body
LE: loop exit
PB: predicated region body
PF: predicated region fallthrough
CT: control target
= control target key end

     0   :  { %8 = vsyncpa [#allocation3], 0  ;;  %s345_s0 = inlined_call_operand.hbm [shape: f32[8,32], index: 0, kind: input, shape index: {}]   ;;  %s346_s1 = inlined_call_operand.hbm [shape: f32[32,128], index: 1, kind: input, shape index: {}]   ;;  %s347_s2 = inlined_call_operand.vmem [shape: f32[1,128], index: 2, kind: input, shape index: {}]   ;;  %s348_s3 = inlined_call_operand.hbm [shape: f32[8,128], index: 3, kind: output, shape index: {}]  }
   0x1   :  { %9 = vsyncpa [#allocation6], 0 }
   0x2   :  { %10 = vsyncpa [#allocation4], 0  ;;  %s271_s12 = smov [#allocation2]   ;;  %s272_s14 = smov [#allocation5]  }
   0x3   :  { %s17_s13 = sshll.u32 %s271_s12, 4  ;;  %s26_s15 = sshll.u32 %s272_s14, 4  ;;  %s18_s13 = int_to_ptr.vmem [resolvable:$true] %s17_s13  ;;  %s299_s15 = int_to_ptr.vmem [resolvable:$true] %s26_s15 }
   0x4   :  { %s199_s18 = scalar_lea.hbm %s345_s0, 128 }
   0x5   :  { %p200_p0 = scmp.ne.s32.totalorder %s345_s0, %s199_s18  ;;  %p203_p1 = scmp.lt.u32.totalorder %s199_s18, %s345_s0 }
   0x7   :  { %p205_p2 = pnand %p203_p1, %p200_p0 }
   0x9   :  { %208 = shalt.err (!%p205_p2)
}
   0xa   :  { %s209_s23 = scalar_lea.vmem %s18_s13, 128  ;;  %p214_p4 = scmp.lt.s32.totalorder %s18_s13, %s18_s13 }
   0xb   :  { %p210_p3 = scmp.ne.s32.totalorder %s18_s13, %s209_s23  ;;  %p215_p5 = scmp.lt.s32.totalorder %s209_s23, %s209_s23 }
   0xd   :  { %p216_p6 = por %p215_p5, %p214_p4 }
   0xf   :  { %p217_p7 = pnand %p216_p6, %p210_p3 }
  0x11   :  { %220 = shalt.err (!%p217_p7)
}
  0x12   :  { %20 = dma.hbm_to_vmem [thread:$0]  %s345_s0, 128, %s18_s13, [#allocation3]  }
  0x13   :  { %s221_s28 = scalar_lea.hbm %s346_s1, 512 }
  0x14   :  { %p222_p8 = scmp.ne.s32.totalorder %s346_s1, %s221_s28  ;;  %p225_p9 = scmp.lt.u32.totalorder %s221_s28, %s346_s1 }
  0x16   :  { %p227_p10 = pnand %p225_p9, %p222_p8 }
  0x18   :  { %230 = shalt.err (!%p227_p10)
}
  0x19   :  { %s231_s6 = scalar_lea.vmem %s299_s15, 512  ;;  %p236_p12 = scmp.lt.s32.totalorder %s299_s15, %s299_s15 }
  0x1a   :  { %p232_p11 = scmp.ne.s32.totalorder %s299_s15, %s231_s6  ;;  %p237_p13 = scmp.lt.s32.totalorder %s231_s6, %s231_s6 }
  0x1c   :  { %p238_p0 = por %p237_p13, %p236_p12 }
  0x1e   :  { %p239_p1 = pnand %p238_p0, %p232_p11 }
  0x20   :  { %242 = shalt.err (!%p239_p1)
}
  0x21   :  { %s273_s0 = smov 128   ;;  %s274_s7 = smov 8  }
  0x22   :  { %32 = dma.hbm_to_vmem [thread:$0]  %s346_s1, 512, %s299_s15, [#allocation6], %s273_s0, %s273_s0, %s274_s7  }
  0x23   :  { %265 = dma.done.wait [#allocation3], 128  }
  0x24   :  { %266 = vsyncadd [#allocation3], 4294967168 }
  0x25   :  { %267 = dma.done.wait [#allocation6], 512  }
  0x26   :  { %268 = vsyncadd [#allocation6], 4294966784  ;;  %v275_v0 = vmov 0.0|0.0   ;;  %vm276_vm0 = vmmov 0   ;;  %v277_v1 = vmov 0.0   ;;  %v42_v2 = vld [vmem:[#allocation5] sm:$0xff]  ;;  %v121_v9 = vlaneseq }
  0x27   :  { %181 = vmatprep.subr.bf16.mxu0 %v275_v0  ;;  %178 = vmatprep.mubr.msk.f32.mxu0 %vm276_vm0, %v277_v1  ;;  %v43_v3 = vld [vmem:[#allocation5 + $0x8] sm:$0xff]  ;;  %v44_v4 = vld [vmem:[#allocation5 + $0x10] sm:$0xff]  ;;  %v45_v6 = vld [vmem:[#allocation5 + $0x18] sm:$0xff]  ;;  %vm46_vm1 = vcmask 261120   ;;  %s278_s11 = smov [#allocation7]  }
  0x28   :  { %v182_v5 = vpack.c.bf16 %v43_v3, %v42_v2  ;;  %v185_v7 = vpack.c.bf16 %v45_v6, %v44_v4  ;;  %v41_v8 = vld [vmem:[#allocation2] sm:$0xff]  ;;  %v122_v10 = vshrl.u32 %v121_v9, 7  ;;  %v126_v11 = vand.u32 127, %v121_v9  ;;  %s153_s12 = sshll.u32 %s278_s11, 4  ;;  %s154_s12 = int_to_ptr.vmem [resolvable:$true] %s153_s12 }
  0x29   :  { %v164_v16 = vld [vmem:[%s347_s2] ss:$0 sm:$0xff]  ;;  %s243_s13 = scalar_lea.vmem %s154_s12, 128  ;;  %p248_p3 = scmp.lt.s32.totalorder %s154_s12, %s154_s12 }
  0x2a   :  { %183 = vmatpush3.bf16.msra.mxu0 %v182_v5  ;;  %vm127_vm2 = vcmp.eq.s32.totalorder %v122_v10, %v126_v11  ;;  %p244_p2 = scmp.ne.s32.totalorder %s154_s12, %s243_s13  ;;  %p249_p4 = scmp.lt.s32.totalorder %s243_s13, %s243_s13 }
  0x2b   :  { %184 = vmatprep.subr.bf16.mxu0 %v275_v0 }
  0x2c   :  { %p250_p5 = por %p249_p4, %p248_p3 }
  0x2e   :  { %186 = vmatpush3.bf16.msra.mxu0 %v185_v7  ;;  %p251_p6 = pnand %p250_p5, %p244_p2 }
  0x31   :  { %179 = vmatmul.mubr.msk.f32.vlgmr.msra.gmra.mrb[0].mxu0 %vm46_vm1, %v41_v8 }
 0x104   :  { %v116_v12 = vpop.f32.mrb[0].mxu0 }
 0x105   :  { %v128_v13 = vsel %vm127_vm2, 0.0, %v116_v12  ;;  %v180_v14 = vpop.f32.mrb[1].mxu0 }
 0x106   :  { %v129_v15 = vmul.f32 1.442695, %v128_v13 }
 0x108   :  { %195 = vpow2.f32 %v129_v15 }
 0x112   :  { %v196_v17 = vpop.eup %195 }
 0x113   :  { %v138_v18 = vmul.f32 %v196_v17, %v164_v16 }
 0x115   :  { %139 = vadd.xlane.f32.xlu0 %v138_v18 }
 0x1a2   :  { %v140_v19 = vpop.xlane.xlu0 %139 }
 0x1a3   :  { %v141_v20 = vadd.f32 %v196_v17, %v140_v19 }
 0x1a5   :  { %197 = vlog2.f32 %v141_v20 }
 0x1af   :  { %v198_v21 = vpop.eup %197 }
 0x1b0   :  { %v143_v22 = vmul.f32 0.6931472, %v198_v21 }
 0x1b2   :  { %v144_v23 = vsub.f32 %v143_v22, %v128_v13 }
 0x1b4   :  { %v145_v24 = vmul.f32 0.1, %v144_v23 }
 0x1b6   :  { %146 = vst [vmem:[#allocation7] sm:$0xff] %v145_v24 }
 0x1b7   :  { %254 = shalt.err (!%p251_p6)
}
 0x1b8   :  { %s255_s15 = scalar_lea.hbm %s348_s3, 128 }
 0x1b9   :  { %p256_p7 = scmp.ne.s32.totalorder %s348_s3, %s255_s15  ;;  %p259_p8 = scmp.lt.u32.totalorder %s255_s15, %s348_s3 }
 0x1bb   :  { %p261_p9 = pnand %p259_p8, %p256_p7 }
 0x1bd   :  { %264 = shalt.err (!%p261_p9)
}
 0x1be   :  { %156 = dma.vmem_to_hbm [thread:$0]  %s154_s12, 128, %s348_s3, [#allocation4]  }
 0x1bf   :  { %269 = dma.done.wait [#allocation4], 128  }
 0x1c0   :  { %270 = vsyncadd [#allocation4], 4294967168 }
 0x1c1   :  { %160 = vsyncpa [#allocation3], 1 }
 0x1c2   :  { %161 = vsyncpa [#allocation6], 1 }
 0x1c3   :  { %162 = vsyncpa [#allocation4], 1 }

</bundles_post_ra>
